<compile_context>
chip_gen: v5e
topology: v5e:2x2
jax: 0.10.0
libtpu: 0.0.40
codegen_flags: <defaults>
</compile_context>

<pallas_src>
import functools

import jax
import jax.numpy as jnp
from jax.experimental import pallas as pl
from jax.experimental.pallas import tpu as pltpu

_LN_EPS = 1e-5            # PyTorch LayerNorm default
_LANE = 128               # lane width (last-dim padding target)
_SUBLANE = 8              # f32 sublane (batch padding target)
_DEFAULT_BATCH_TILE = 512
_DEFAULT_VMEM_CAP = 64 * 1024 * 1024   # conservative (v7x per-TC) fallback


def _round_up(n, m):
    return ((n + m - 1) // m) * m


def _vmem_capacity_bytes():
    try:
        return int(pltpu.get_tpu_info().vmem_capacity_bytes)
    except Exception:
        return _DEFAULT_VMEM_CAP


# ---------------------------------------------------------------------------
# Fused kernel: whole MLP for one (tm, D0_pad) batch tile.
# refs = (x, [w_i, bgb_i] * n_hidden, w_out, b_out, o_ref)
#   bgb_i is an (8, H_pad) block: row0 = bias, row1 = gamma, row2 = beta.
# ---------------------------------------------------------------------------
def _fused_mlp_kernel(*refs, n_hidden, true_hidden, eps, mxu_dtype):
    x_ref = refs[0]
    o_ref = refs[-1]
    w_out_ref = refs[-3]
    b_out_ref = refs[-2]

    h = x_ref[...]                                   # (tm, D0_pad) f32
    idx = 1
    for li in range(n_hidden):
        w_ref, bgb_ref = refs[idx], refs[idx + 1]
        idx += 2
        bgb = bgb_ref[...]                           # (8, Hp) f32
        bias, gamma, beta = bgb[0:1, :], bgb[1:2, :], bgb[2:3, :]

        # Linear: bf16 (or f32) operands into the MXU, f32 accumulation.
        # Padded K-rows / N-cols of W and padded bias lanes are zero, so the
        # padded output lanes of y are exactly 0.
        y = jnp.dot(h.astype(mxu_dtype), w_ref[...],
                    preferred_element_type=jnp.float32) + bias

        # LayerNorm over the TRUE feature count.  Because padded lanes of y
        # are exactly 0, no lane mask is needed; both reductions issue
        # directly from y (single-pass variance E[y^2] - mean^2).
        inv_n = 1.0 / float(true_hidden[li])
        mean = jnp.sum(y, axis=-1, keepdims=True) * inv_n
        ey2 = jnp.sum(y * y, axis=-1, keepdims=True) * inv_n
        var = jnp.maximum(ey2 - mean * mean, 0.0)
        inv_std = jax.lax.rsqrt(var + eps)           # EUP slot

        # scale/shift + ReLU; padded lanes: (0 - mean)*inv_std*0 + 0 = 0.
        h = jnp.maximum((y - mean) * (inv_std * gamma) + beta, 0.0)

    out = jnp.dot(h.astype(mxu_dtype), w_out_ref[...],
                  preferred_element_type=jnp.float32) + b_out_ref[...]
    o_ref[...] = out.astype(o_ref.dtype)


# ---------------------------------------------------------------------------
# Parameter construction (PyTorch-default-style uniform init) + lane padding
# ---------------------------------------------------------------------------
def init_normalized_mlp_params(key, input_dim, hidden_dims, output_dim):
    params = []
    d_in = input_dim
    dims = list(hidden_dims) + [output_dim]
    for i, d_out in enumerate(dims):
        key, kw, kb = jax.random.split(key, 3)
        bound = 1.0 / (d_in ** 0.5)
        w = jax.random.uniform(kw, (d_in, d_out), jnp.float32, -bound, bound)
        b = jax.random.uniform(kb, (1, d_out), jnp.float32, -bound, bound)
        if i < len(hidden_dims):
            params.append(dict(w=w, b=b,
                               gamma=jnp.ones((1, d_out), jnp.float32),
                               beta=jnp.zeros((1, d_out), jnp.float32)))
        else:
            params.append(dict(w=w, b=b))
        d_in = d_out
    return params


def pad_params(params, input_dim, hidden_dims, output_dim,
               param_dtype=jnp.bfloat16):
    """Zero-pad feature dims to multiples of 128, cast W to param_dtype and
    pack bias/gamma/beta into one (8, H_pad) sublane-aligned block."""
    dims = [input_dim] + list(hidden_dims) + [output_dim]
    pdims = [_round_up(d, _LANE) for d in dims]
    padded = []
    for i, layer in enumerate(params):
        din, dout = dims[i], dims[i + 1]
        pin, pout = pdims[i], pdims[i + 1]
        w = jnp.pad(layer["w"], ((0, pin - din), (0, pout - dout)))
        w = w.astype(param_dtype)
        b = jnp.pad(layer["b"], ((0, 0), (0, pout - dout))).astype(jnp.float32)
        if "gamma" in layer:
            g = jnp.pad(layer["gamma"], ((0, 0), (0, pout - dout)))
            bt = jnp.pad(layer["beta"], ((0, 0), (0, pout - dout)))
            bgb = jnp.concatenate(
                [b, g.astype(jnp.float32), bt.astype(jnp.float32),
                 jnp.zeros((5, pout), jnp.float32)], axis=0)      # (8, pout)
            padded.append(dict(w=w, bgb=bgb))
        else:
            padded.append(dict(w=w, b=b))
    return padded


# ---------------------------------------------------------------------------
# Forward builder: one fused pallas_call, batch-tiled grid, resident weights.
# ---------------------------------------------------------------------------
def build_forward(input_dim, hidden_dims, output_dim, *,
                  param_dtype=jnp.bfloat16,
                  batch_tile=_DEFAULT_BATCH_TILE,
                  single_buffer_params=True):
    n_hidden = len(hidden_dims)
    dims = [input_dim] + list(hidden_dims) + [output_dim]
    pdims = [_round_up(d, _LANE) for d in dims]

    kernel = functools.partial(_fused_mlp_kernel,
                               n_hidden=n_hidden,
                               true_hidden=tuple(hidden_dims),
                               eps=_LN_EPS,
                               mxu_dtype=param_dtype)

    # ---- VMEM budget ------------------------------------------------------
    wbytes = 2 if param_dtype == jnp.bfloat16 else 4
    n_buf = 1 if single_buffer_params else 2
    param_vmem = 0
    for li in range(n_hidden):
        param_vmem += (pdims[li] * pdims[li + 1] * wbytes
                       + 8 * pdims[li + 1] * 4) * n_buf
    param_vmem += (pdims[-2] * pdims[-1] * wbytes + 8 * pdims[-1] * 4) * n_buf

    vmem_cap = _vmem_capacity_bytes()
    vmem_limit = min(int(vmem_cap * 0.8), 100 * 1024 * 1024)

    if param_vmem > int(vmem_limit * 0.9):
        # TODO(synk): add an N-tiled (output-feature) fallback — extra grid
        # axis or pltpu.emit_pipeline over weight tiles — when the resident-
        # weight design does not fit VMEM (notably v7x's 64 MiB).
        raise ValueError(
            f"Padded parameters ({param_vmem / 2**20:.1f} MiB) exceed the VMEM "
            f"budget ({vmem_limit / 2**20:.1f} MiB); shrink hidden dims or use "
            "bf16 params / single_buffer_params=True.")

    def _const_spec(shape):
        # Constant index_map => block never re-fetched; request a single
        # buffer to halve the parameter VMEM footprint.
        if single_buffer_params and hasattr(pl, "Buffered"):
            try:
                return pl.BlockSpec(shape, lambda i: (0, 0),
                                    pipeline_mode=pl.Buffered(1))
            except TypeError:
                pass
        return pl.BlockSpec(shape, lambda i: (0, 0))

    def _pick_tile(Bp):
        if Bp <= _SUBLANE:
            tm = Bp
        else:
            # >= 2 grid steps whenever possible (v7x dual-TC sharding).
            half = _round_up((Bp + 1) // 2, _SUBLANE)
            tm = min(batch_tile, half)
        # shrink the tile until activation tiles fit the remaining budget
        def act_bytes(t):
            return 4 * t * (2 * (pdims[0] + pdims[-1]) + 2 * max(pdims))
        while tm > _SUBLANE and param_vmem + act_bytes(tm) > vmem_limit:
            tm = max(_SUBLANE, _round_up(tm // 2, _SUBLANE))
        return tm

    def forward(x, padded_params):
        B = x.shape[0]
        Bp = _round_up(B, _SUBLANE)
        tm = _pick_tile(Bp)
        Bp = _round_up(Bp, tm)

        # TODO(synk): for latency-critical tiny batches, accept pre-padded x
        # and return the padded output directly to skip these wrapper copies.
        xp = jnp.pad(x.astype(jnp.float32),
                     ((0, Bp - B), (0, pdims[0] - input_dim)))

        # x/out are tiled over the batch grid axis; every parameter uses a
        # constant index_map and stays VMEM-resident across grid steps.
        flat_inputs = [xp]
        in_specs = [pl.BlockSpec((tm, pdims[0]), lambda i: (i, 0))]
        for li in range(n_hidden):
            layer = padded_params[li]
            pin, pout = pdims[li], pdims[li + 1]
            flat_inputs += [layer["w"], layer["bgb"]]
            in_specs += [_const_spec((pin, pout)), _const_spec((8, pout))]
        last = padded_params[-1]
        flat_inputs += [last["w"], last["b"]]
        in_specs += [_const_spec((pdims[-2], pdims[-1])),
                     _const_spec((1, pdims[-1]))]
        out_spec = pl.BlockSpec((tm, pdims[-1]), lambda i: (i, 0))

        flops = 2 * Bp * sum(pdims[i] * pdims[i + 1]
                             for i in range(len(pdims) - 1))
        bytes_accessed = int(sum(int(a.size) * a.dtype.itemsize
                                 for a in flat_inputs)
                             + Bp * pdims[-1] * 4)
        cost = pl.CostEstimate(flops=int(flops),
                               transcendentals=int(Bp * n_hidden),
                               bytes_accessed=bytes_accessed)

        out_padded = pl.pallas_call(
            kernel,
            out_shape=jax.ShapeDtypeStruct((Bp, pdims[-1]), jnp.float32),
            grid=(Bp // tm,),
            in_specs=in_specs,
            out_specs=out_spec,
            compiler_params=pltpu.CompilerParams(
                dimension_semantics=("parallel",),
                vmem_limit_bytes=vmem_limit),
            cost_estimate=cost,
        )(*flat_inputs)

        return out_padded[:B, :output_dim]

    return jax.jit(forward)


# ---------------------------------------------------------------------------
# Pure-JAX reference (correctness check against original, unpadded params)
# ---------------------------------------------------------------------------
def _reference_forward(x, params):
    h = x
    for layer in params[:-1]:
        y = h @ layer["w"] + layer["b"]
        mean = jnp.mean(y, axis=-1, keepdims=True)
        var = jnp.mean((y - mean) ** 2, axis=-1, keepdims=True)
        y = (y - mean) / jnp.sqrt(var + _LN_EPS)
        y = y * layer["gamma"] + layer["beta"]
        h = jnp.maximum(y, 0.0)
    return h @ params[-1]["w"] + params[-1]["b"]


if __name__ == "__main__":
    key = jax.random.PRNGKey(0)
    k_x, k_p = jax.random.split(key)

    batch = 8
    input_dim = 32
    hidden_dims = (64, 64)
    output_dim = 16

    x = jax.random.normal(k_x, (batch, input_dim), jnp.float32)
    params = init_normalized_mlp_params(k_p, input_dim, hidden_dims, output_dim)
    ref = _reference_forward(x, params)

    def _run(param_dtype, single_buffer):
        padded = pad_params(params, input_dim, hidden_dims, output_dim,
                            param_dtype=param_dtype)
        fwd = build_forward(input_dim, hidden_dims, output_dim,
                            param_dtype=param_dtype,
                            single_buffer_params=single_buffer)
        return jax.block_until_ready(fwd(x, padded))

    def _run_with_fallback(param_dtype):
        try:
            return _run(param_dtype, True)
        except Exception:
            # pl.Buffered(1) not accepted on this build -> default buffering.
            return _run(param_dtype, False)

    # Exact-precision mode: f32 everywhere (faithful to the PyTorch module).
    out_f32 = _run_with_fallback(jnp.float32)
    assert out_f32.shape == (batch, output_dim)
    assert jnp.allclose(out_f32, ref, atol=1e-4, rtol=1e-4), float(
        jnp.max(jnp.abs(out_f32 - ref)))

    # Performance mode: bf16 MXU operands / weights, f32 accumulation + f32 LN.
    out_bf16 = _run_with_fallback(jnp.bfloat16)
    assert out_bf16.shape == (batch, output_dim)
    assert jnp.allclose(out_bf16, ref, atol=3e-2, rtol=3e-2), float(
        jnp.max(jnp.abs(out_bf16 - ref)))

    print("KERNEL_OK")
</pallas_src>

<mosaic_0001>
module attributes {stable_mosaic.version = 11 : i64} {
  func.func @_fused_mlp_kernel(%arg0: i32, %arg1: memref<8x128xf32, #tpu.memory_space<vmem>>, %arg2: memref<128x128xf32, #tpu.memory_space<vmem>>, %arg3: memref<8x128xf32, #tpu.memory_space<vmem>>, %arg4: memref<128x128xf32, #tpu.memory_space<vmem>>, %arg5: memref<8x128xf32, #tpu.memory_space<vmem>>, %arg6: memref<128x128xf32, #tpu.memory_space<vmem>>, %arg7: memref<1x128xf32, #tpu.memory_space<vmem>>, %arg8: memref<8x128xf32, #tpu.memory_space<vmem>>) attributes {dimension_semantics = [#tpu.dimension_semantics<parallel>], iteration_bounds = array<i64: 1>, scalar_prefetch = 0 : i64, scratch_operands = 0 : i64, tpu.core_type = #tpu.core_type<tc>, window_params = [{transform_indices = @transform_0, window_bounds = array<i64: 8, 128>}, {pipeline_mode = #tpu.pipeline_mode<synchronous>, transform_indices = @transform_1, window_bounds = array<i64: 128, 128>}, {pipeline_mode = #tpu.pipeline_mode<synchronous>, transform_indices = @transform_2, window_bounds = array<i64: 8, 128>}, {pipeline_mode = #tpu.pipeline_mode<synchronous>, transform_indices = @transform_3, window_bounds = array<i64: 128, 128>}, {pipeline_mode = #tpu.pipeline_mode<synchronous>, transform_indices = @transform_4, window_bounds = array<i64: 8, 128>}, {pipeline_mode = #tpu.pipeline_mode<synchronous>, transform_indices = @transform_5, window_bounds = array<i64: 128, 128>}, {pipeline_mode = #tpu.pipeline_mode<synchronous>, transform_indices = @transform_6, window_bounds = array<i64: 1, 128>}, {transform_indices = @transform_7, window_bounds = array<i64: 8, 128>}]} {
    %c0 = arith.constant 0 : index
    %c0_0 = arith.constant 0 : index
    %0 = vector.load %arg1[%c0, %c0_0] : memref<8x128xf32, #tpu.memory_space<vmem>>, vector<8x128xf32>
    %c0_1 = arith.constant 0 : index
    %c0_2 = arith.constant 0 : index
    %1 = vector.load %arg3[%c0_1, %c0_2] : memref<8x128xf32, #tpu.memory_space<vmem>>, vector<8x128xf32>
    %2 = vector.extract_strided_slice %1 {offsets = [0, 0], sizes = [1, 128], strides = [1, 1]} : vector<8x128xf32> to vector<1x128xf32>
    %3 = vector.extract_strided_slice %1 {offsets = [1, 0], sizes = [1, 128], strides = [1, 1]} : vector<8x128xf32> to vector<1x128xf32>
    %4 = vector.extract_strided_slice %1 {offsets = [2, 0], sizes = [1, 128], strides = [1, 1]} : vector<8x128xf32> to vector<1x128xf32>
    %c0_3 = arith.constant 0 : index
    %c0_4 = arith.constant 0 : index
    %5 = vector.load %arg2[%c0_3, %c0_4] : memref<128x128xf32, #tpu.memory_space<vmem>>, vector<128x128xf32>
    %cst = arith.constant dense<0.000000e+00> : vector<8x128xf32>
    %6 = tpu.matmul %0, %5, %cst {dimension_numbers = #tpu.dot_dimension_numbers<[1], [0], [0], [1], [0, 0, 1, 1], [], []>} : vector<8x128xf32>, vector<128x128xf32>, vector<8x128xf32> -> vector<8x128xf32>
    %7 = vector.broadcast %2 : vector<1x128xf32> to vector<8x128xf32>
    %8 = arith.addf %6, %7 : vector<8x128xf32>
    %cst_5 = arith.constant dense<0.000000e+00> : vector<8xf32>
    %9 = vector.multi_reduction <add>, %8, %cst_5 [1] : vector<8x128xf32> to vector<8xf32>
    %10 = vector.shape_cast %9 : vector<8xf32> to vector<8x1xf32>
    %cst_6 = arith.constant 1.562500e-02 : f32
    %11 = vector.broadcast %cst_6 : f32 to vector<8x1xf32>
    %12 = arith.mulf %10, %11 : vector<8x1xf32>
    %13 = arith.mulf %8, %8 : vector<8x128xf32>
    %cst_7 = arith.constant dense<0.000000e+00> : vector<8xf32>
    %14 = vector.multi_reduction <add>, %13, %cst_7 [1] : vector<8x128xf32> to vector<8xf32>
    %15 = vector.shape_cast %14 : vector<8xf32> to vector<8x1xf32>
    %cst_8 = arith.constant 1.562500e-02 : f32
    %16 = vector.broadcast %cst_8 : f32 to vector<8x1xf32>
    %17 = arith.mulf %15, %16 : vector<8x1xf32>
    %18 = arith.mulf %12, %12 : vector<8x1xf32>
    %19 = arith.subf %17, %18 : vector<8x1xf32>
    %cst_9 = arith.constant 0.000000e+00 : f32
    %20 = vector.broadcast %cst_9 : f32 to vector<8x1xf32>
    %21 = arith.maximumf %19, %20 : vector<8x1xf32>
    %cst_10 = arith.constant 9.99999974E-6 : f32
    %22 = vector.broadcast %cst_10 : f32 to vector<8x1xf32>
    %23 = arith.addf %21, %22 : vector<8x1xf32>
    %24 = math.rsqrt %23 : vector<8x1xf32>
    %25 = vector.broadcast %12 : vector<8x1xf32> to vector<8x128xf32>
    %26 = arith.subf %8, %25 : vector<8x128xf32>
    %27 = vector.broadcast %24 : vector<8x1xf32> to vector<8x128xf32>
    %28 = vector.broadcast %3 : vector<1x128xf32> to vector<8x128xf32>
    %29 = arith.mulf %27, %28 : vector<8x128xf32>
    %30 = arith.mulf %26, %29 : vector<8x128xf32>
    %31 = vector.broadcast %4 : vector<1x128xf32> to vector<8x128xf32>
    %32 = arith.addf %30, %31 : vector<8x128xf32>
    %cst_11 = arith.constant 0.000000e+00 : f32
    %33 = vector.broadcast %cst_11 : f32 to vector<8x128xf32>
    %34 = arith.maximumf %32, %33 : vector<8x128xf32>
    %c0_12 = arith.constant 0 : index
    %c0_13 = arith.constant 0 : index
    %35 = vector.load %arg5[%c0_12, %c0_13] : memref<8x128xf32, #tpu.memory_space<vmem>>, vector<8x128xf32>
    %36 = vector.extract_strided_slice %35 {offsets = [0, 0], sizes = [1, 128], strides = [1, 1]} : vector<8x128xf32> to vector<1x128xf32>
    %37 = vector.extract_strided_slice %35 {offsets = [1, 0], sizes = [1, 128], strides = [1, 1]} : vector<8x128xf32> to vector<1x128xf32>
    %38 = vector.extract_strided_slice %35 {offsets = [2, 0], sizes = [1, 128], strides = [1, 1]} : vector<8x128xf32> to vector<1x128xf32>
    %c0_14 = arith.constant 0 : index
    %c0_15 = arith.constant 0 : index
    %39 = vector.load %arg4[%c0_14, %c0_15] : memref<128x128xf32, #tpu.memory_space<vmem>>, vector<128x128xf32>
    %cst_16 = arith.constant dense<0.000000e+00> : vector<8x128xf32>
    %40 = tpu.matmul %34, %39, %cst_16 {dimension_numbers = #tpu.dot_dimension_numbers<[1], [0], [0], [1], [0, 0, 1, 1], [], []>} : vector<8x128xf32>, vector<128x128xf32>, vector<8x128xf32> -> vector<8x128xf32>
    %41 = vector.broadcast %36 : vector<1x128xf32> to vector<8x128xf32>
    %42 = arith.addf %40, %41 : vector<8x128xf32>
    %cst_17 = arith.constant dense<0.000000e+00> : vector<8xf32>
    %43 = vector.multi_reduction <add>, %42, %cst_17 [1] : vector<8x128xf32> to vector<8xf32>
    %44 = vector.shape_cast %43 : vector<8xf32> to vector<8x1xf32>
    %cst_18 = arith.constant 1.562500e-02 : f32
    %45 = vector.broadcast %cst_18 : f32 to vector<8x1xf32>
    %46 = arith.mulf %44, %45 : vector<8x1xf32>
    %47 = arith.mulf %42, %42 : vector<8x128xf32>
    %cst_19 = arith.constant dense<0.000000e+00> : vector<8xf32>
    %48 = vector.multi_reduction <add>, %47, %cst_19 [1] : vector<8x128xf32> to vector<8xf32>
    %49 = vector.shape_cast %48 : vector<8xf32> to vector<8x1xf32>
    %cst_20 = arith.constant 1.562500e-02 : f32
    %50 = vector.broadcast %cst_20 : f32 to vector<8x1xf32>
    %51 = arith.mulf %49, %50 : vector<8x1xf32>
    %52 = arith.mulf %46, %46 : vector<8x1xf32>
    %53 = arith.subf %51, %52 : vector<8x1xf32>
    %cst_21 = arith.constant 0.000000e+00 : f32
    %54 = vector.broadcast %cst_21 : f32 to vector<8x1xf32>
    %55 = arith.maximumf %53, %54 : vector<8x1xf32>
    %cst_22 = arith.constant 9.99999974E-6 : f32
    %56 = vector.broadcast %cst_22 : f32 to vector<8x1xf32>
    %57 = arith.addf %55, %56 : vector<8x1xf32>
    %58 = math.rsqrt %57 : vector<8x1xf32>
    %59 = vector.broadcast %46 : vector<8x1xf32> to vector<8x128xf32>
    %60 = arith.subf %42, %59 : vector<8x128xf32>
    %61 = vector.broadcast %58 : vector<8x1xf32> to vector<8x128xf32>
    %62 = vector.broadcast %37 : vector<1x128xf32> to vector<8x128xf32>
    %63 = arith.mulf %61, %62 : vector<8x128xf32>
    %64 = arith.mulf %60, %63 : vector<8x128xf32>
    %65 = vector.broadcast %38 : vector<1x128xf32> to vector<8x128xf32>
    %66 = arith.addf %64, %65 : vector<8x128xf32>
    %cst_23 = arith.constant 0.000000e+00 : f32
    %67 = vector.broadcast %cst_23 : f32 to vector<8x128xf32>
    %68 = arith.maximumf %66, %67 : vector<8x128xf32>
    %c0_24 = arith.constant 0 : index
    %c0_25 = arith.constant 0 : index
    %69 = vector.load %arg6[%c0_24, %c0_25] : memref<128x128xf32, #tpu.memory_space<vmem>>, vector<128x128xf32>
    %cst_26 = arith.constant dense<0.000000e+00> : vector<8x128xf32>
    %70 = tpu.matmul %68, %69, %cst_26 {dimension_numbers = #tpu.dot_dimension_numbers<[1], [0], [0], [1], [0, 0, 1, 1], [], []>} : vector<8x128xf32>, vector<128x128xf32>, vector<8x128xf32> -> vector<8x128xf32>
    %c0_27 = arith.constant 0 : index
    %c0_28 = arith.constant 0 : index
    %71 = vector.load %arg7[%c0_27, %c0_28] : memref<1x128xf32, #tpu.memory_space<vmem>>, vector<1x128xf32>
    %72 = vector.broadcast %71 : vector<1x128xf32> to vector<8x128xf32>
    %73 = arith.addf %70, %72 : vector<8x128xf32>
    %c0_29 = arith.constant 0 : index
    %c0_30 = arith.constant 0 : index
    %74 = vector.load %arg8[%c0_29, %c0_30] : memref<8x128xf32, #tpu.memory_space<vmem>>, vector<8x128xf32>
    tpu.vector_store %arg8[%c0_29, %c0_30], %73 {strides = array<i32>} : memref<8x128xf32, #tpu.memory_space<vmem>>, vector<8x128xf32>,
    return
  }
  func.func @transform_0(%arg0: i32) -> (i32, i32) {
    %c0_i32 = arith.constant 0 : i32
    %c0_i32_0 = arith.constant 0 : i32
    return %arg0, %c0_i32 : i32, i32
  }
  func.func @transform_1(%arg0: i32) -> (i32, i32) {
    %c0_i32 = arith.constant 0 : i32
    %c0_i32_0 = arith.constant 0 : i32
    %c0_i32_1 = arith.constant 0 : i32
    return %c0_i32, %c0_i32_0 : i32, i32
  }
  func.func @transform_2(%arg0: i32) -> (i32, i32) {
    %c0_i32 = arith.constant 0 : i32
    %c0_i32_0 = arith.constant 0 : i32
    %c0_i32_1 = arith.constant 0 : i32
    return %c0_i32, %c0_i32_0 : i32, i32
  }
  func.func @transform_3(%arg0: i32) -> (i32, i32) {
    %c0_i32 = arith.constant 0 : i32
    %c0_i32_0 = arith.constant 0 : i32
    %c0_i32_1 = arith.constant 0 : i32
    return %c0_i32, %c0_i32_0 : i32, i32
  }
  func.func @transform_4(%arg0: i32) -> (i32, i32) {
    %c0_i32 = arith.constant 0 : i32
    %c0_i32_0 = arith.constant 0 : i32
    %c0_i32_1 = arith.constant 0 : i32
    return %c0_i32, %c0_i32_0 : i32, i32
  }
  func.func @transform_5(%arg0: i32) -> (i32, i32) {
    %c0_i32 = arith.constant 0 : i32
    %c0_i32_0 = arith.constant 0 : i32
    %c0_i32_1 = arith.constant 0 : i32
    return %c0_i32, %c0_i32_0 : i32, i32
  }
  func.func @transform_6(%arg0: i32) -> (i32, i32) {
    %c0_i32 = arith.constant 0 : i32
    %c0_i32_0 = arith.constant 0 : i32
    %c0_i32_1 = arith.constant 0 : i32
    return %c0_i32, %c0_i32_0 : i32, i32
  }
  func.func @transform_7(%arg0: i32) -> (i32, i32) {
    %c0_i32 = arith.constant 0 : i32
    %c0_i32_0 = arith.constant 0 : i32
    return %arg0, %c0_i32 : i32, i32
  }
}

module attributes {stable_mosaic.version = 11 : i64} {
  func.func @_fused_mlp_kernel(%arg0: i32, %arg1: memref<8x128xf32, #tpu.memory_space<vmem>>, %arg2: memref<128x128xf32, #tpu.memory_space<vmem>>, %arg3: memref<8x128xf32, #tpu.memory_space<vmem>>, %arg4: memref<128x128xf32, #tpu.memory_space<vmem>>, %arg5: memref<8x128xf32, #tpu.memory_space<vmem>>, %arg6: memref<128x128xf32, #tpu.memory_space<vmem>>, %arg7: memref<1x128xf32, #tpu.memory_space<vmem>>, %arg8: memref<8x128xf32, #tpu.memory_space<vmem>>) attributes {dimension_semantics = [#tpu.dimension_semantics<parallel>], iteration_bounds = array<i64: 1>, scalar_prefetch = 0 : i64, scratch_operands = 0 : i64, tpu.core_type = #tpu.core_type<tc>, window_params = [{transform_indices = @transform_0, window_bounds = array<i64: 8, 128>}, {pipeline_mode = #tpu.pipeline_mode<synchronous>, transform_indices = @transform_1, window_bounds = array<i64: 128, 128>}, {pipeline_mode = #tpu.pipeline_mode<synchronous>, transform_indices = @transform_2, window_bounds = array<i64: 8, 128>}, {pipeline_mode = #tpu.pipeline_mode<synchronous>, transform_indices = @transform_3, window_bounds = array<i64: 128, 128>}, {pipeline_mode = #tpu.pipeline_mode<synchronous>, transform_indices = @transform_4, window_bounds = array<i64: 8, 128>}, {pipeline_mode = #tpu.pipeline_mode<synchronous>, transform_indices = @transform_5, window_bounds = array<i64: 128, 128>}, {pipeline_mode = #tpu.pipeline_mode<synchronous>, transform_indices = @transform_6, window_bounds = array<i64: 1, 128>}, {transform_indices = @transform_7, window_bounds = array<i64: 8, 128>}]} {
    %c0 = arith.constant 0 : index
    %c0_0 = arith.constant 0 : index
    %0 = vector.load %arg1[%c0, %c0_0] : memref<8x128xf32, #tpu.memory_space<vmem>>, vector<8x128xf32>
    %c0_1 = arith.constant 0 : index
    %c0_2 = arith.constant 0 : index
    %1 = vector.load %arg3[%c0_1, %c0_2] : memref<8x128xf32, #tpu.memory_space<vmem>>, vector<8x128xf32>
    %2 = vector.extract_strided_slice %1 {offsets = [0, 0], sizes = [1, 128], strides = [1, 1]} : vector<8x128xf32> to vector<1x128xf32>
    %3 = vector.extract_strided_slice %1 {offsets = [1, 0], sizes = [1, 128], strides = [1, 1]} : vector<8x128xf32> to vector<1x128xf32>
    %4 = vector.extract_strided_slice %1 {offsets = [2, 0], sizes = [1, 128], strides = [1, 1]} : vector<8x128xf32> to vector<1x128xf32>
    %c0_3 = arith.constant 0 : index
    %c0_4 = arith.constant 0 : index
    %5 = vector.load %arg2[%c0_3, %c0_4] : memref<128x128xf32, #tpu.memory_space<vmem>>, vector<128x128xf32>
    %cst = arith.constant dense<0.000000e+00> : vector<8x128xf32>
    %6 = tpu.matmul %0, %5, %cst {dimension_numbers = #tpu.dot_dimension_numbers<[1], [0], [0], [1], [0, 0, 1, 1], [], []>} : vector<8x128xf32>, vector<128x128xf32>, vector<8x128xf32> -> vector<8x128xf32>
    %7 = vector.broadcast %2 : vector<1x128xf32> to vector<8x128xf32>
    %8 = arith.addf %6, %7 : vector<8x128xf32>
    %cst_5 = arith.constant dense<0.000000e+00> : vector<8xf32>
    %9 = vector.multi_reduction <add>, %8, %cst_5 [1] : vector<8x128xf32> to vector<8xf32>
    %10 = vector.shape_cast %9 : vector<8xf32> to vector<8x1xf32>
    %cst_6 = arith.constant 1.562500e-02 : f32
    %11 = vector.broadcast %cst_6 : f32 to vector<8x1xf32>
    %12 = arith.mulf %10, %11 : vector<8x1xf32>
    %13 = arith.mulf %8, %8 : vector<8x128xf32>
    %cst_7 = arith.constant dense<0.000000e+00> : vector<8xf32>
    %14 = vector.multi_reduction <add>, %13, %cst_7 [1] : vector<8x128xf32> to vector<8xf32>
    %15 = vector.shape_cast %14 : vector<8xf32> to vector<8x1xf32>
    %cst_8 = arith.constant 1.562500e-02 : f32
    %16 = vector.broadcast %cst_8 : f32 to vector<8x1xf32>
    %17 = arith.mulf %15, %16 : vector<8x1xf32>
    %18 = arith.mulf %12, %12 : vector<8x1xf32>
    %19 = arith.subf %17, %18 : vector<8x1xf32>
    %cst_9 = arith.constant 0.000000e+00 : f32
    %20 = vector.broadcast %cst_9 : f32 to vector<8x1xf32>
    %21 = arith.maximumf %19, %20 : vector<8x1xf32>
    %cst_10 = arith.constant 9.99999974E-6 : f32
    %22 = vector.broadcast %cst_10 : f32 to vector<8x1xf32>
    %23 = arith.addf %21, %22 : vector<8x1xf32>
    %24 = math.rsqrt %23 : vector<8x1xf32>
    %25 = vector.broadcast %12 : vector<8x1xf32> to vector<8x128xf32>
    %26 = arith.subf %8, %25 : vector<8x128xf32>
    %27 = vector.broadcast %24 : vector<8x1xf32> to vector<8x128xf32>
    %28 = vector.broadcast %3 : vector<1x128xf32> to vector<8x128xf32>
    %29 = arith.mulf %27, %28 : vector<8x128xf32>
    %30 = arith.mulf %26, %29 : vector<8x128xf32>
    %31 = vector.broadcast %4 : vector<1x128xf32> to vector<8x128xf32>
    %32 = arith.addf %30, %31 : vector<8x128xf32>
    %cst_11 = arith.constant 0.000000e+00 : f32
    %33 = vector.broadcast %cst_11 : f32 to vector<8x128xf32>
    %34 = arith.maximumf %32, %33 : vector<8x128xf32>
    %c0_12 = arith.constant 0 : index
    %c0_13 = arith.constant 0 : index
    %35 = vector.load %arg5[%c0_12, %c0_13] : memref<8x128xf32, #tpu.memory_space<vmem>>, vector<8x128xf32>
    %36 = vector.extract_strided_slice %35 {offsets = [0, 0], sizes = [1, 128], strides = [1, 1]} : vector<8x128xf32> to vector<1x128xf32>
    %37 = vector.extract_strided_slice %35 {offsets = [1, 0], sizes = [1, 128], strides = [1, 1]} : vector<8x128xf32> to vector<1x128xf32>
    %38 = vector.extract_strided_slice %35 {offsets = [2, 0], sizes = [1, 128], strides = [1, 1]} : vector<8x128xf32> to vector<1x128xf32>
    %c0_14 = arith.constant 0 : index
    %c0_15 = arith.constant 0 : index
    %39 = vector.load %arg4[%c0_14, %c0_15] : memref<128x128xf32, #tpu.memory_space<vmem>>, vector<128x128xf32>
    %cst_16 = arith.constant dense<0.000000e+00> : vector<8x128xf32>
    %40 = tpu.matmul %34, %39, %cst_16 {dimension_numbers = #tpu.dot_dimension_numbers<[1], [0], [0], [1], [0, 0, 1, 1], [], []>} : vector<8x128xf32>, vector<128x128xf32>, vector<8x128xf32> -> vector<8x128xf32>
    %41 = vector.broadcast %36 : vector<1x128xf32> to vector<8x128xf32>
    %42 = arith.addf %40, %41 : vector<8x128xf32>
    %cst_17 = arith.constant dense<0.000000e+00> : vector<8xf32>
    %43 = vector.multi_reduction <add>, %42, %cst_17 [1] : vector<8x128xf32> to vector<8xf32>
    %44 = vector.shape_cast %43 : vector<8xf32> to vector<8x1xf32>
    %cst_18 = arith.constant 1.562500e-02 : f32
    %45 = vector.broadcast %cst_18 : f32 to vector<8x1xf32>
    %46 = arith.mulf %44, %45 : vector<8x1xf32>
    %47 = arith.mulf %42, %42 : vector<8x128xf32>
    %cst_19 = arith.constant dense<0.000000e+00> : vector<8xf32>
    %48 = vector.multi_reduction <add>, %47, %cst_19 [1] : vector<8x128xf32> to vector<8xf32>
    %49 = vector.shape_cast %48 : vector<8xf32> to vector<8x1xf32>
    %cst_20 = arith.constant 1.562500e-02 : f32
    %50 = vector.broadcast %cst_20 : f32 to vector<8x1xf32>
    %51 = arith.mulf %49, %50 : vector<8x1xf32>
    %52 = arith.mulf %46, %46 : vector<8x1xf32>
    %53 = arith.subf %51, %52 : vector<8x1xf32>
    %cst_21 = arith.constant 0.000000e+00 : f32
    %54 = vector.broadcast %cst_21 : f32 to vector<8x1xf32>
    %55 = arith.maximumf %53, %54 : vector<8x1xf32>
    %cst_22 = arith.constant 9.99999974E-6 : f32
    %56 = vector.broadcast %cst_22 : f32 to vector<8x1xf32>
    %57 = arith.addf %55, %56 : vector<8x1xf32>
    %58 = math.rsqrt %57 : vector<8x1xf32>
    %59 = vector.broadcast %46 : vector<8x1xf32> to vector<8x128xf32>
    %60 = arith.subf %42, %59 : vector<8x128xf32>
    %61 = vector.broadcast %58 : vector<8x1xf32> to vector<8x128xf32>
    %62 = vector.broadcast %37 : vector<1x128xf32> to vector<8x128xf32>
    %63 = arith.mulf %61, %62 : vector<8x128xf32>
    %64 = arith.mulf %60, %63 : vector<8x128xf32>
    %65 = vector.broadcast %38 : vector<1x128xf32> to vector<8x128xf32>
    %66 = arith.addf %64, %65 : vector<8x128xf32>
    %cst_23 = arith.constant 0.000000e+00 : f32
    %67 = vector.broadcast %cst_23 : f32 to vector<8x128xf32>
    %68 = arith.maximumf %66, %67 : vector<8x128xf32>
    %c0_24 = arith.constant 0 : index
    %c0_25 = arith.constant 0 : index
    %69 = vector.load %arg6[%c0_24, %c0_25] : memref<128x128xf32, #tpu.memory_space<vmem>>, vector<128x128xf32>
    %cst_26 = arith.constant dense<0.000000e+00> : vector<8x128xf32>
    %70 = tpu.matmul %68, %69, %cst_26 {dimension_numbers = #tpu.dot_dimension_numbers<[1], [0], [0], [1], [0, 0, 1, 1], [], []>} : vector<8x128xf32>, vector<128x128xf32>, vector<8x128xf32> -> vector<8x128xf32>
    %c0_27 = arith.constant 0 : index
    %c0_28 = arith.constant 0 : index
    %71 = vector.load %arg7[%c0_27, %c0_28] : memref<1x128xf32, #tpu.memory_space<vmem>>, vector<1x128xf32>
    %72 = vector.broadcast %71 : vector<1x128xf32> to vector<8x128xf32>
    %73 = arith.addf %70, %72 : vector<8x128xf32>
    %c0_29 = arith.constant 0 : index
    %c0_30 = arith.constant 0 : index
    %74 = vector.load %arg8[%c0_29, %c0_30] : memref<8x128xf32, #tpu.memory_space<vmem>>, vector<8x128xf32>
    tpu.vector_store %arg8[%c0_29, %c0_30], %73 {strides = array<i32>} : memref<8x128xf32, #tpu.memory_space<vmem>>, vector<8x128xf32>,
    return
  }
  func.func @transform_0(%arg0: i32) -> (i32, i32) {
    %c0_i32 = arith.constant 0 : i32
    %c0_i32_0 = arith.constant 0 : i32
    return %arg0, %c0_i32 : i32, i32
  }
  func.func @transform_1(%arg0: i32) -> (i32, i32) {
    %c0_i32 = arith.constant 0 : i32
    %c0_i32_0 = arith.constant 0 : i32
    %c0_i32_1 = arith.constant 0 : i32
    return %c0_i32, %c0_i32_0 : i32, i32
  }
  func.func @transform_2(%arg0: i32) -> (i32, i32) {
    %c0_i32 = arith.constant 0 : i32
    %c0_i32_0 = arith.constant 0 : i32
    %c0_i32_1 = arith.constant 0 : i32
    return %c0_i32, %c0_i32_0 : i32, i32
  }
  func.func @transform_3(%arg0: i32) -> (i32, i32) {
    %c0_i32 = arith.constant 0 : i32
    %c0_i32_0 = arith.constant 0 : i32
    %c0_i32_1 = arith.constant 0 : i32
    return %c0_i32, %c0_i32_0 : i32, i32
  }
  func.func @transform_4(%arg0: i32) -> (i32, i32) {
    %c0_i32 = arith.constant 0 : i32
    %c0_i32_0 = arith.constant 0 : i32
    %c0_i32_1 = arith.constant 0 : i32
    return %c0_i32, %c0_i32_0 : i32, i32
  }
  func.func @transform_5(%arg0: i32) -> (i32, i32) {
    %c0_i32 = arith.constant 0 : i32
    %c0_i32_0 = arith.constant 0 : i32
    %c0_i32_1 = arith.constant 0 : i32
    return %c0_i32, %c0_i32_0 : i32, i32
  }
  func.func @transform_6(%arg0: i32) -> (i32, i32) {
    %c0_i32 = arith.constant 0 : i32
    %c0_i32_0 = arith.constant 0 : i32
    %c0_i32_1 = arith.constant 0 : i32
    return %c0_i32, %c0_i32_0 : i32, i32
  }
  func.func @transform_7(%arg0: i32) -> (i32, i32) {
    %c0_i32 = arith.constant 0 : i32
    %c0_i32_0 = arith.constant 0 : i32
    return %arg0, %c0_i32 : i32, i32
  }
}

</mosaic_0001>

<bundles_post_ra>
// kernel: forward.1
= control target key start
LH: loop header
LB: loop body
LE: loop exit
PB: predicated region body
PF: predicated region fallthrough
CT: control target
= control target key end

     0   :  { %12 = vsyncpa [#allocation3], 0  ;;  %s459_s0 = inlined_call_operand.vmem [shape: f32[8,128], index: 0, kind: input, shape index: {}]   ;;  %s460_s1 = inlined_call_operand.hbm [shape: f32[128,128], index: 1, kind: input, shape index: {}]   ;;  %s461_s2 = inlined_call_operand.vmem [shape: f32[8,128], index: 2, kind: input, shape index: {}]   ;;  %s462_s3 = inlined_call_operand.hbm [shape: f32[128,128], index: 3, kind: input, shape index: {}]   ;;  %s463_s4 = inlined_call_operand.vmem [shape: f32[8,128], index: 4, kind: input, shape index: {}]   ;;  %s464_s5 = inlined_call_operand.hbm [shape: f32[128,128], index: 5, kind: input, shape index: {}]   ;;  %s465_s6 = inlined_call_operand.vmem [shape: f32[1,128], index: 6, kind: input, shape index: {}]   ;;  %s466_s7 = inlined_call_operand.hbm [shape: f32[8,128], index: 7, kind: output, shape index: {}]  }
   0x1   :  { %13 = vsyncpa [#allocation6], 0 }
   0x2   :  { %14 = vsyncpa [#allocation4], 0  ;;  %s36_s26 = sshll.u32 %s462_s3, 4  ;;  %s379_s27 = smov [#allocation5]   ;;  %s37_s26 = int_to_ptr.hbm [resolvable:$true] %s36_s26 }
   0x3   :  { %s38_s28 = sshll.u32 %s379_s27, 4  ;;  %s21_s8 = sshll.u32 %s460_s1, 4  ;;  %s39_s28 = int_to_ptr.vmem [resolvable:$true] %s38_s28  ;;  %s22_s8 = int_to_ptr.hbm [resolvable:$true] %s21_s8 }
   0x4   :  { %s380_s9 = smov 128   ;;  %s381_s10 = smov 8  }
   0x5   :  { %44 = dma.hbm_to_vmem [thread:$0]  %s37_s26, 2048, %s39_s28, [#allocation6], %s380_s9, %s380_s9, %s381_s10  }
   0x6   :  { %s382_s11 = smov [#allocation2]   ;;  %s51_s15 = sshll.u32 %s464_s5, 4  ;;  %s52_s15 = int_to_ptr.hbm [resolvable:$true] %s51_s15 }
   0x7   :  { %s23_s12 = sshll.u32 %s382_s11, 4  ;;  %s383_s3 = smov [#allocation7]   ;;  %s24_s12 = int_to_ptr.vmem [resolvable:$true] %s23_s12 }
   0x8   :  { %29 = dma.hbm_to_vmem [thread:$0]  %s22_s8, 2048, %s24_s12, [#allocation3], %s380_s9, %s380_s9, %s381_s10  }
   0x9   :  { %s53_s16 = sshll.u32 %s383_s3, 4  ;;  %s54_s16 = int_to_ptr.vmem [resolvable:$true] %s53_s16 }
   0xa   :  { %59 = dma.hbm_to_vmem [thread:$0]  %s52_s15, 2048, %s54_s16, [#allocation6], %s380_s9, %s380_s9, %s381_s10  }
   0xb   :  { %373 = dma.done.wait [#allocation3], 2048  }
   0xc   :  { %374 = vsyncadd [#allocation3], 4294965248 }
   0xd   :  { %375 = dma.done.wait [#allocation6], 4096  }
   0xe   :  { %376 = vsyncadd [#allocation6], 4294963200  ;;  %v91_v0 = vld [vmem:[#allocation2 + $0x78] sm:$0xff]  ;;  %v90_v1 = vld [vmem:[#allocation2 + $0x70] sm:$0xff]  ;;  %s384_s20 = smov [#allocation8]   ;;  %s255_s24 = sshll.u32 %s466_s7, 4  ;;  %s256_s24 = int_to_ptr.hbm [resolvable:$true] %s255_s24 }
   0xf   :  { %93 = vmatpush.msra.mxu0 %v91_v0  ;;  %v89_v2 = vld [vmem:[#allocation2 + $0x68] sm:$0xff]  ;;  %v88_v3 = vld [vmem:[#allocation2 + $0x60] sm:$0xff]  ;;  %v87_v4 = vld [vmem:[#allocation2 + $0x58] sm:$0xff]  ;;  %s253_s21 = sshll.u32 %s384_s20, 4  ;;  %s254_s21 = int_to_ptr.vmem [resolvable:$true] %s253_s21 }
  0x10   :  { %v86_v5 = vld [vmem:[#allocation2 + $0x50] sm:$0xff]  ;;  %v85_v6 = vld [vmem:[#allocation2 + $0x48] sm:$0xff]  ;;  %v84_v7 = vld [vmem:[#allocation2 + $0x40] sm:$0xff] }
  0x11   :  { %94 = vmatpush.msra.mxu0 %v90_v1  ;;  %v83_v8 = vld [vmem:[#allocation2 + $0x38] sm:$0xff]  ;;  %v82_v9 = vld [vmem:[#allocation2 + $0x30] sm:$0xff]  ;;  %v81_v10 = vld [vmem:[#allocation2 + $0x28] sm:$0xff] }
  0x12   :  { %v80_v11 = vld [vmem:[#allocation2 + $0x20] sm:$0xff]  ;;  %v79_v12 = vld [vmem:[#allocation2 + $0x18] sm:$0xff]  ;;  %v78_v13 = vld [vmem:[#allocation2 + $0x10] sm:$0xff] }
  0x13   :  { %95 = vmatpush.msra.mxu0 %v89_v2  ;;  %v77_v14 = vld [vmem:[#allocation2 + $0x8] sm:$0xff]  ;;  %v76_v15 = vld [vmem:[#allocation2] sm:$0xff]  ;;  %v157_v22 = vld [vmem:[#allocation5 + $0x78] sm:$0xff] }
  0x14   :  { %v74_v16 = vld [vmem:[%s459_s0] sm:$0xff]  ;;  %159 = vmatpush.msra.mxu1 %v157_v22  ;;  %v156_v23 = vld [vmem:[#allocation5 + $0x70] sm:$0xff]  ;;  %v155_v24 = vld [vmem:[#allocation5 + $0x68] sm:$0xff] }
  0x15   :  { %96 = vmatpush.msra.mxu0 %v88_v3  ;;  %v440_v17 = vld [vmem:[%s461_s2] sm:$0xff]  ;;  %v153_v26 = vld [vmem:[#allocation5 + $0x58] sm:$0xff]  ;;  %v152_v27 = vld [vmem:[#allocation5 + $0x50] sm:$0xff] }
  0x16   :  { %v92_v18 = vperm.slane %v440_v17, 0  ;;  %160 = vmatpush.msra.mxu1 %v156_v23  ;;  %v154_v25 = vld [vmem:[#allocation5 + $0x60] sm:$0xff]  ;;  %v151_v28 = vld [vmem:[#allocation5 + $0x48] sm:$0xff]  ;;  %v149_v30 = vld [vmem:[#allocation5 + $0x38] sm:$0xff]  ;;  %v135_v51 = vperm.slane %v440_v17, 1  ;;  %v138_v56 = vperm.slane %v440_v17, 2 }
  0x17   :  { %97 = vmatpush.msra.mxu0 %v87_v4  ;;  %v150_v29 = vld [vmem:[#allocation5 + $0x40] sm:$0xff]  ;;  %v148_v31 = vld [vmem:[#allocation5 + $0x30] sm:$0xff]  ;;  %v147_v32 = vld [vmem:[#allocation5 + $0x28] sm:$0xff] }
  0x18   :  { %161 = vmatpush.msra.mxu1 %v155_v24  ;;  %v146_v33 = vld [vmem:[#allocation5 + $0x20] sm:$0xff]  ;;  %v145_v35 = vld [vmem:[#allocation5 + $0x18] sm:$0xff]  ;;  %v144_v36 = vld [vmem:[#allocation5 + $0x10] sm:$0xff] }
  0x19   :  { %98 = vmatpush.msra.mxu0 %v86_v5  ;;  %v143_v38 = vld [vmem:[#allocation5 + $0x8] sm:$0xff]  ;;  %v142_v39 = vld [vmem:[#allocation5] sm:$0xff]  ;;  %v222_v1 = vld [vmem:[#allocation7 + $0x78] sm:$0xff] }
  0x1a   :  { %162 = vmatpush.msra.mxu1 %v154_v25  ;;  %v448_v60 = vld [vmem:[%s463_s4] sm:$0xff]  ;;  %227 = vmatpush.msra.mxu2 %v222_v1  ;;  %v221_v2 = vld [vmem:[#allocation7 + $0x70] sm:$0xff]  ;;  %v220_v3 = vld [vmem:[#allocation7 + $0x68] sm:$0xff] }
  0x1b   :  { %99 = vmatpush.msra.mxu0 %v85_v6  ;;  %v158_v61 = vperm.slane %v448_v60, 0  ;;  %v219_v4 = vld [vmem:[#allocation7 + $0x60] sm:$0xff]  ;;  %v218_v5 = vld [vmem:[#allocation7 + $0x58] sm:$0xff]  ;;  %v217_v6 = vld [vmem:[#allocation7 + $0x50] sm:$0xff] }
  0x1c   :  { %163 = vmatpush.msra.mxu1 %v153_v26  ;;  %228 = vmatpush.msra.mxu2 %v221_v2  ;;  %v208_v17 = vld [vmem:[#allocation7 + $0x8] sm:$0xff] }
  0x1d   :  { %100 = vmatpush.msra.mxu0 %v84_v7  ;;  %v216_v7 = vld [vmem:[#allocation7 + $0x48] sm:$0xff] }
  0x1e   :  { %164 = vmatpush.msra.mxu1 %v152_v27  ;;  %229 = vmatpush.msra.mxu2 %v220_v3 }
  0x1f   :  { %101 = vmatpush.msra.mxu0 %v83_v8  ;;  %v215_v8 = vld [vmem:[#allocation7 + $0x40] sm:$0xff] }
  0x20   :  { %165 = vmatpush.msra.mxu1 %v151_v28  ;;  %230 = vmatpush.msra.mxu2 %v219_v4 }
  0x21   :  { %102 = vmatpush.msra.mxu0 %v82_v9  ;;  %v214_v9 = vld [vmem:[#allocation7 + $0x38] sm:$0xff] }
  0x22   :  { %166 = vmatpush.msra.mxu1 %v150_v29  ;;  %231 = vmatpush.msra.mxu2 %v218_v5 }
  0x23   :  { %103 = vmatpush.msra.mxu0 %v81_v10  ;;  %v213_v10 = vld [vmem:[#allocation7 + $0x30] sm:$0xff] }
  0x24   :  { %167 = vmatpush.msra.mxu1 %v149_v30  ;;  %232 = vmatpush.msra.mxu2 %v217_v6  ;;  %v201_v30 = vperm.slane %v448_v60, 1 }
  0x25   :  { %104 = vmatpush.msra.mxu0 %v80_v11  ;;  %v212_v11 = vld [vmem:[#allocation7 + $0x28] sm:$0xff] }
  0x26   :  { %168 = vmatpush.msra.mxu1 %v148_v31  ;;  %233 = vmatpush.msra.mxu2 %v216_v7 }
  0x27   :  { %105 = vmatpush.msra.mxu0 %v79_v12  ;;  %v211_v12 = vld [vmem:[#allocation7 + $0x20] sm:$0xff] }
  0x28   :  { %169 = vmatpush.msra.mxu1 %v147_v32  ;;  %234 = vmatpush.msra.mxu2 %v215_v8 }
  0x29   :  { %106 = vmatpush.msra.mxu0 %v78_v13 }
  0x2a   :  { %170 = vmatpush.msra.mxu1 %v146_v33  ;;  %235 = vmatpush.msra.mxu2 %v214_v9 }
  0x2b   :  { %107 = vmatpush.msra.mxu0 %v77_v14  ;;  %v210_v14 = vld [vmem:[#allocation7 + $0x18] sm:$0xff] }
  0x2c   :  { %171 = vmatpush.msra.mxu1 %v145_v35  ;;  %236 = vmatpush.msra.mxu2 %v213_v10  ;;  %v204_v35 = vperm.slane %v448_v60, 2 }
  0x2d   :  { %108 = vmatpush.msra.mxu0 %v76_v15  ;;  %v209_v15 = vld [vmem:[#allocation7 + $0x10] sm:$0xff] }
  0x2e   :  { %109 = vmatmul.f32.vlgmr.msra.gmra.mxu0 %v74_v16  ;;  %172 = vmatpush.msra.mxu1 %v144_v36 }
  0x2f   :  { %237 = vmatpush.msra.mxu2 %v212_v11 }
  0x30   :  { %173 = vmatpush.msra.mxu1 %v143_v38 }
  0x31   :  { %238 = vmatpush.msra.mxu2 %v211_v12 }
  0x32   :  { %174 = vmatpush.msra.mxu1 %v142_v39  ;;  %v272_v39 = vld [vmem:[%s465_s6] ss:$0 sm:$0xff] }
  0x33   :  { %239 = vmatpush.msra.mxu2 %v210_v14 }
  0x35   :  { %240 = vmatpush.msra.mxu2 %v209_v15 }
  0x37   :  { %241 = vmatpush.msra.mxu2 %v208_v17 }
  0xab   :  { %v110_v19 = vpop.f32.mrf.mxu0 }
  0xac   :  { %v111_v20 = vadd.f32 %v110_v19, %v92_v18  ;;  %v207_v18 = vld [vmem:[#allocation7] sm:$0xff] }
  0xad   :  { %242 = vmatpush.msra.mxu2 %v207_v18 }
  0xae   :  { %113 = vadd.xlane.f32.xlu0 %v111_v20  ;;  %v116_v21 = vmul.f32 %v111_v20, %v111_v20 }
  0xb6   :  { %117 = vadd.xlane.f32.xlu0 %v116_v21 }
 0x121   :  { %v114_v34 = vpop.xlane.xlu0 %113 }
 0x122   :  { %v115_v37 = vmul.f32 0.015625, %v114_v34 }
 0x124   :  { %v120_v41 = vmul.f32 %v115_v37, %v115_v37  ;;  %v134_v54 = vsub.f32 %v111_v20, %v115_v37 }
 0x129   :  { %v118_v40 = vpop.xlane.xlu0 %117 }
 0x12a   :  { %v119_v42 = vmul.f32 0.015625, %v118_v40 }
 0x12c   :  { %v121_v43 = vsub.f32 %v119_v42, %v120_v41 }
 0x12e   :  { %v122_v44 = vmax.f32 %v121_v43, 0.0 }
 0x130   :  { %v123_v45 = vadd.f32 1e-05, %v122_v44 }
 0x132   :  { %273 = vrsqrt.f32 %v123_v45  ;;  %vm130_vm1 = vweird.f32 %v123_v45 }
 0x138   :  { %v274_v46 = vpop.eup %273 }
 0x139   :  { %v125_v47 = vmul.f32 %v274_v46, %v123_v45  ;;  %vm131_vm0 = vweird.f32 %v274_v46 }
 0x13a   :  { %vm132_vm2 = vmor %vm130_vm1, %vm131_vm0 }
 0x13b   :  { %v126_v48 = vmul.f32 %v274_v46, %v125_v47 }
 0x13d   :  { %v127_v49 = vmul.f32 0.5, %v126_v48 }
 0x13f   :  { %v128_v50 = vsub.f32 1.5, %v127_v49 }
 0x141   :  { %v129_v52 = vmul.f32 %v274_v46, %v128_v50 }
 0x143   :  { %v133_v53 = vsel %vm132_vm2, %v274_v46, %v129_v52 }
 0x144   :  { %v136_v55 = vmul.f32 %v135_v51, %v133_v53 }
 0x146   :  { %v137_v57 = vmul.f32 %v136_v55, %v134_v54 }
 0x148   :  { %v139_v58 = vadd.f32 %v138_v56, %v137_v57 }
 0x14a   :  { %v140_v59 = vmax.f32 %v139_v58, 0.0 }
 0x14c   :  { %175 = vmatmul.f32.vlgmr.msra.gmra.mxu1 %v140_v59 }
 0x1c9   :  { %v176_v62 = vpop.f32.mrf.mxu1 }
 0x1ca   :  { %v177_v63 = vadd.f32 %v176_v62, %v158_v61 }
 0x1cc   :  { %179 = vadd.xlane.f32.xlu1 %v177_v63  ;;  %v182_v0 = vmul.f32 %v177_v63, %v177_v63 }
 0x1d4   :  { %183 = vadd.xlane.f32.xlu1 %v182_v0 }
 0x23f   :  { %v180_v13 = vpop.xlane.xlu1 %179 }
 0x240   :  { %v181_v16 = vmul.f32 0.015625, %v180_v13 }
 0x242   :  { %v186_v20 = vmul.f32 %v181_v16, %v181_v16  ;;  %v200_v33 = vsub.f32 %v177_v63, %v181_v16 }
 0x247   :  { %v184_v19 = vpop.xlane.xlu1 %183 }
 0x248   :  { %v185_v21 = vmul.f32 0.015625, %v184_v19 }
 0x24a   :  { %v187_v22 = vsub.f32 %v185_v21, %v186_v20 }
 0x24c   :  { %v188_v23 = vmax.f32 %v187_v22, 0.0 }
 0x24e   :  { %v189_v24 = vadd.f32 1e-05, %v188_v23 }
 0x250   :  { %275 = vrsqrt.f32 %v189_v24  ;;  %vm196_vm4 = vweird.f32 %v189_v24 }
 0x256   :  { %v276_v25 = vpop.eup %275 }
 0x257   :  { %v191_v26 = vmul.f32 %v276_v25, %v189_v24  ;;  %vm197_vm3 = vweird.f32 %v276_v25 }
 0x258   :  { %vm198_vm5 = vmor %vm196_vm4, %vm197_vm3 }
 0x259   :  { %v192_v27 = vmul.f32 %v276_v25, %v191_v26 }
 0x25b   :  { %v193_v28 = vmul.f32 0.5, %v192_v27 }
 0x25d   :  { %v194_v29 = vsub.f32 1.5, %v193_v28 }
 0x25f   :  { %v195_v31 = vmul.f32 %v276_v25, %v194_v29 }
 0x261   :  { %v199_v32 = vsel %vm198_vm5, %v276_v25, %v195_v31 }
 0x262   :  { %v202_v34 = vmul.f32 %v201_v30, %v199_v32 }
 0x264   :  { %v203_v36 = vmul.f32 %v202_v34, %v200_v33 }
 0x266   :  { %v205_v37 = vadd.f32 %v204_v35, %v203_v36 }
 0x268   :  { %v206_v38 = vmax.f32 %v205_v37, 0.0 }
 0x26a   :  { %243 = vmatmul.f32.vlgmr.msra.gmra.mxu2 %v206_v38 }
 0x2ed   :  { %v244_v40 = vpop.f32.mrf.mxu2 }
 0x2ee   :  { %v245_v41 = vadd.f32 %v272_v39, %v244_v40 }
 0x2f0   :  { %247 = vst [vmem:[#allocation8] sm:$0xff] %v245_v41 }
 0x2f1   :  { %258 = dma.vmem_to_hbm [thread:$0]  %s254_s21, 128, %s256_s24, [#allocation4]  }
 0x2f2   :  { %377 = dma.done.wait [#allocation4], 128  }
 0x2f3   :  { %378 = vsyncadd [#allocation4], 4294967168 }
 0x2f4   :  { %263 = vsyncpa [#allocation3], 1 }
 0x2f5   :  { %264 = vsyncpa [#allocation6], 1 }
 0x2f6   :  { %265 = vsyncpa [#allocation4], 1 }

// kernel: forward.1
= control target key start
LH: loop header
LB: loop body
LE: loop exit
PB: predicated region body
PF: predicated region fallthrough
CT: control target
= control target key end

     0   :  { %12 = vsyncpa [#allocation3], 0  ;;  %s459_s0 = inlined_call_operand.vmem [shape: f32[8,128], index: 0, kind: input, shape index: {}]   ;;  %s460_s1 = inlined_call_operand.hbm [shape: f32[128,128], index: 1, kind: input, shape index: {}]   ;;  %s461_s2 = inlined_call_operand.vmem [shape: f32[8,128], index: 2, kind: input, shape index: {}]   ;;  %s462_s3 = inlined_call_operand.hbm [shape: f32[128,128], index: 3, kind: input, shape index: {}]   ;;  %s463_s4 = inlined_call_operand.vmem [shape: f32[8,128], index: 4, kind: input, shape index: {}]   ;;  %s464_s5 = inlined_call_operand.hbm [shape: f32[128,128], index: 5, kind: input, shape index: {}]   ;;  %s465_s6 = inlined_call_operand.vmem [shape: f32[1,128], index: 6, kind: input, shape index: {}]   ;;  %s466_s7 = inlined_call_operand.hbm [shape: f32[8,128], index: 7, kind: output, shape index: {}]  }
   0x1   :  { %13 = vsyncpa [#allocation6], 0 }
   0x2   :  { %14 = vsyncpa [#allocation4], 0  ;;  %s36_s26 = sshll.u32 %s462_s3, 4  ;;  %s379_s27 = smov [#allocation5]   ;;  %s37_s26 = int_to_ptr.hbm [resolvable:$true] %s36_s26 }
   0x3   :  { %s38_s28 = sshll.u32 %s379_s27, 4  ;;  %s21_s8 = sshll.u32 %s460_s1, 4  ;;  %s39_s28 = int_to_ptr.vmem [resolvable:$true] %s38_s28  ;;  %s22_s8 = int_to_ptr.hbm [resolvable:$true] %s21_s8 }
   0x4   :  { %s380_s9 = smov 128   ;;  %s381_s10 = smov 8  }
   0x5   :  { %44 = dma.hbm_to_vmem [thread:$0]  %s37_s26, 2048, %s39_s28, [#allocation6], %s380_s9, %s380_s9, %s381_s10  }
   0x6   :  { %s382_s11 = smov [#allocation2]   ;;  %s51_s15 = sshll.u32 %s464_s5, 4  ;;  %s52_s15 = int_to_ptr.hbm [resolvable:$true] %s51_s15 }
   0x7   :  { %s23_s12 = sshll.u32 %s382_s11, 4  ;;  %s383_s3 = smov [#allocation7]   ;;  %s24_s12 = int_to_ptr.vmem [resolvable:$true] %s23_s12 }
   0x8   :  { %29 = dma.hbm_to_vmem [thread:$0]  %s22_s8, 2048, %s24_s12, [#allocation3], %s380_s9, %s380_s9, %s381_s10  }
   0x9   :  { %s53_s16 = sshll.u32 %s383_s3, 4  ;;  %s54_s16 = int_to_ptr.vmem [resolvable:$true] %s53_s16 }
   0xa   :  { %59 = dma.hbm_to_vmem [thread:$0]  %s52_s15, 2048, %s54_s16, [#allocation6], %s380_s9, %s380_s9, %s381_s10  }
   0xb   :  { %373 = dma.done.wait [#allocation3], 2048  }
   0xc   :  { %374 = vsyncadd [#allocation3], 4294965248 }
   0xd   :  { %375 = dma.done.wait [#allocation6], 4096  }
   0xe   :  { %376 = vsyncadd [#allocation6], 4294963200  ;;  %v91_v0 = vld [vmem:[#allocation2 + $0x78] sm:$0xff]  ;;  %v90_v1 = vld [vmem:[#allocation2 + $0x70] sm:$0xff]  ;;  %s384_s20 = smov [#allocation8]   ;;  %s255_s24 = sshll.u32 %s466_s7, 4  ;;  %s256_s24 = int_to_ptr.hbm [resolvable:$true] %s255_s24 }
   0xf   :  { %93 = vmatpush.msra.mxu0 %v91_v0  ;;  %v89_v2 = vld [vmem:[#allocation2 + $0x68] sm:$0xff]  ;;  %v88_v3 = vld [vmem:[#allocation2 + $0x60] sm:$0xff]  ;;  %v87_v4 = vld [vmem:[#allocation2 + $0x58] sm:$0xff]  ;;  %s253_s21 = sshll.u32 %s384_s20, 4  ;;  %s254_s21 = int_to_ptr.vmem [resolvable:$true] %s253_s21 }
  0x10   :  { %v86_v5 = vld [vmem:[#allocation2 + $0x50] sm:$0xff]  ;;  %v85_v6 = vld [vmem:[#allocation2 + $0x48] sm:$0xff]  ;;  %v84_v7 = vld [vmem:[#allocation2 + $0x40] sm:$0xff] }
  0x11   :  { %94 = vmatpush.msra.mxu0 %v90_v1  ;;  %v83_v8 = vld [vmem:[#allocation2 + $0x38] sm:$0xff]  ;;  %v82_v9 = vld [vmem:[#allocation2 + $0x30] sm:$0xff]  ;;  %v81_v10 = vld [vmem:[#allocation2 + $0x28] sm:$0xff] }
  0x12   :  { %v80_v11 = vld [vmem:[#allocation2 + $0x20] sm:$0xff]  ;;  %v79_v12 = vld [vmem:[#allocation2 + $0x18] sm:$0xff]  ;;  %v78_v13 = vld [vmem:[#allocation2 + $0x10] sm:$0xff] }
  0x13   :  { %95 = vmatpush.msra.mxu0 %v89_v2  ;;  %v77_v14 = vld [vmem:[#allocation2 + $0x8] sm:$0xff]  ;;  %v76_v15 = vld [vmem:[#allocation2] sm:$0xff]  ;;  %v157_v22 = vld [vmem:[#allocation5 + $0x78] sm:$0xff] }
  0x14   :  { %v74_v16 = vld [vmem:[%s459_s0] sm:$0xff]  ;;  %159 = vmatpush.msra.mxu1 %v157_v22  ;;  %v156_v23 = vld [vmem:[#allocation5 + $0x70] sm:$0xff]  ;;  %v155_v24 = vld [vmem:[#allocation5 + $0x68] sm:$0xff] }
  0x15   :  { %96 = vmatpush.msra.mxu0 %v88_v3  ;;  %v440_v17 = vld [vmem:[%s461_s2] sm:$0xff]  ;;  %v153_v26 = vld [vmem:[#allocation5 + $0x58] sm:$0xff]  ;;  %v152_v27 = vld [vmem:[#allocation5 + $0x50] sm:$0xff] }
  0x16   :  { %v92_v18 = vperm.slane %v440_v17, 0  ;;  %160 = vmatpush.msra.mxu1 %v156_v23  ;;  %v154_v25 = vld [vmem:[#allocation5 + $0x60] sm:$0xff]  ;;  %v151_v28 = vld [vmem:[#allocation5 + $0x48] sm:$0xff]  ;;  %v149_v30 = vld [vmem:[#allocation5 + $0x38] sm:$0xff]  ;;  %v135_v51 = vperm.slane %v440_v17, 1  ;;  %v138_v56 = vperm.slane %v440_v17, 2 }
  0x17   :  { %97 = vmatpush.msra.mxu0 %v87_v4  ;;  %v150_v29 = vld [vmem:[#allocation5 + $0x40] sm:$0xff]  ;;  %v148_v31 = vld [vmem:[#allocation5 + $0x30] sm:$0xff]  ;;  %v147_v32 = vld [vmem:[#allocation5 + $0x28] sm:$0xff] }
  0x18   :  { %161 = vmatpush.msra.mxu1 %v155_v24  ;;  %v146_v33 = vld [vmem:[#allocation5 + $0x20] sm:$0xff]  ;;  %v145_v35 = vld [vmem:[#allocation5 + $0x18] sm:$0xff]  ;;  %v144_v36 = vld [vmem:[#allocation5 + $0x10] sm:$0xff] }
  0x19   :  { %98 = vmatpush.msra.mxu0 %v86_v5  ;;  %v143_v38 = vld [vmem:[#allocation5 + $0x8] sm:$0xff]  ;;  %v142_v39 = vld [vmem:[#allocation5] sm:$0xff]  ;;  %v222_v1 = vld [vmem:[#allocation7 + $0x78] sm:$0xff] }
  0x1a   :  { %162 = vmatpush.msra.mxu1 %v154_v25  ;;  %v448_v60 = vld [vmem:[%s463_s4] sm:$0xff]  ;;  %227 = vmatpush.msra.mxu2 %v222_v1  ;;  %v221_v2 = vld [vmem:[#allocation7 + $0x70] sm:$0xff]  ;;  %v220_v3 = vld [vmem:[#allocation7 + $0x68] sm:$0xff] }
  0x1b   :  { %99 = vmatpush.msra.mxu0 %v85_v6  ;;  %v158_v61 = vperm.slane %v448_v60, 0  ;;  %v219_v4 = vld [vmem:[#allocation7 + $0x60] sm:$0xff]  ;;  %v218_v5 = vld [vmem:[#allocation7 + $0x58] sm:$0xff]  ;;  %v217_v6 = vld [vmem:[#allocation7 + $0x50] sm:$0xff] }
  0x1c   :  { %163 = vmatpush.msra.mxu1 %v153_v26  ;;  %228 = vmatpush.msra.mxu2 %v221_v2  ;;  %v208_v17 = vld [vmem:[#allocation7 + $0x8] sm:$0xff] }
  0x1d   :  { %100 = vmatpush.msra.mxu0 %v84_v7  ;;  %v216_v7 = vld [vmem:[#allocation7 + $0x48] sm:$0xff] }
  0x1e   :  { %164 = vmatpush.msra.mxu1 %v152_v27  ;;  %229 = vmatpush.msra.mxu2 %v220_v3 }
  0x1f   :  { %101 = vmatpush.msra.mxu0 %v83_v8  ;;  %v215_v8 = vld [vmem:[#allocation7 + $0x40] sm:$0xff] }
  0x20   :  { %165 = vmatpush.msra.mxu1 %v151_v28  ;;  %230 = vmatpush.msra.mxu2 %v219_v4 }
  0x21   :  { %102 = vmatpush.msra.mxu0 %v82_v9  ;;  %v214_v9 = vld [vmem:[#allocation7 + $0x38] sm:$0xff] }
  0x22   :  { %166 = vmatpush.msra.mxu1 %v150_v29  ;;  %231 = vmatpush.msra.mxu2 %v218_v5 }
  0x23   :  { %103 = vmatpush.msra.mxu0 %v81_v10  ;;  %v213_v10 = vld [vmem:[#allocation7 + $0x30] sm:$0xff] }
  0x24   :  { %167 = vmatpush.msra.mxu1 %v149_v30  ;;  %232 = vmatpush.msra.mxu2 %v217_v6  ;;  %v201_v30 = vperm.slane %v448_v60, 1 }
  0x25   :  { %104 = vmatpush.msra.mxu0 %v80_v11  ;;  %v212_v11 = vld [vmem:[#allocation7 + $0x28] sm:$0xff] }
  0x26   :  { %168 = vmatpush.msra.mxu1 %v148_v31  ;;  %233 = vmatpush.msra.mxu2 %v216_v7 }
  0x27   :  { %105 = vmatpush.msra.mxu0 %v79_v12  ;;  %v211_v12 = vld [vmem:[#allocation7 + $0x20] sm:$0xff] }
  0x28   :  { %169 = vmatpush.msra.mxu1 %v147_v32  ;;  %234 = vmatpush.msra.mxu2 %v215_v8 }
  0x29   :  { %106 = vmatpush.msra.mxu0 %v78_v13 }
  0x2a   :  { %170 = vmatpush.msra.mxu1 %v146_v33  ;;  %235 = vmatpush.msra.mxu2 %v214_v9 }
  0x2b   :  { %107 = vmatpush.msra.mxu0 %v77_v14  ;;  %v210_v14 = vld [vmem:[#allocation7 + $0x18] sm:$0xff] }
  0x2c   :  { %171 = vmatpush.msra.mxu1 %v145_v35  ;;  %236 = vmatpush.msra.mxu2 %v213_v10  ;;  %v204_v35 = vperm.slane %v448_v60, 2 }
  0x2d   :  { %108 = vmatpush.msra.mxu0 %v76_v15  ;;  %v209_v15 = vld [vmem:[#allocation7 + $0x10] sm:$0xff] }
  0x2e   :  { %109 = vmatmul.f32.vlgmr.msra.gmra.mxu0 %v74_v16  ;;  %172 = vmatpush.msra.mxu1 %v144_v36 }
  0x2f   :  { %237 = vmatpush.msra.mxu2 %v212_v11 }
  0x30   :  { %173 = vmatpush.msra.mxu1 %v143_v38 }
  0x31   :  { %238 = vmatpush.msra.mxu2 %v211_v12 }
  0x32   :  { %174 = vmatpush.msra.mxu1 %v142_v39  ;;  %v272_v39 = vld [vmem:[%s465_s6] ss:$0 sm:$0xff] }
  0x33   :  { %239 = vmatpush.msra.mxu2 %v210_v14 }
  0x35   :  { %240 = vmatpush.msra.mxu2 %v209_v15 }
  0x37   :  { %241 = vmatpush.msra.mxu2 %v208_v17 }
  0xab   :  { %v110_v19 = vpop.f32.mrf.mxu0 }
  0xac   :  { %v111_v20 = vadd.f32 %v110_v19, %v92_v18  ;;  %v207_v18 = vld [vmem:[#allocation7] sm:$0xff] }
  0xad   :  { %242 = vmatpush.msra.mxu2 %v207_v18 }
  0xae   :  { %113 = vadd.xlane.f32.xlu0 %v111_v20  ;;  %v116_v21 = vmul.f32 %v111_v20, %v111_v20 }
  0xb6   :  { %117 = vadd.xlane.f32.xlu0 %v116_v21 }
 0x121   :  { %v114_v34 = vpop.xlane.xlu0 %113 }
 0x122   :  { %v115_v37 = vmul.f32 0.015625, %v114_v34 }
 0x124   :  { %v120_v41 = vmul.f32 %v115_v37, %v115_v37  ;;  %v134_v54 = vsub.f32 %v111_v20, %v115_v37 }
 0x129   :  { %v118_v40 = vpop.xlane.xlu0 %117 }
 0x12a   :  { %v119_v42 = vmul.f32 0.015625, %v118_v40 }
 0x12c   :  { %v121_v43 = vsub.f32 %v119_v42, %v120_v41 }
 0x12e   :  { %v122_v44 = vmax.f32 %v121_v43, 0.0 }
 0x130   :  { %v123_v45 = vadd.f32 1e-05, %v122_v44 }
 0x132   :  { %273 = vrsqrt.f32 %v123_v45  ;;  %vm130_vm1 = vweird.f32 %v123_v45 }
 0x138   :  { %v274_v46 = vpop.eup %273 }
 0x139   :  { %v125_v47 = vmul.f32 %v274_v46, %v123_v45  ;;  %vm131_vm0 = vweird.f32 %v274_v46 }
 0x13a   :  { %vm132_vm2 = vmor %vm130_vm1, %vm131_vm0 }
 0x13b   :  { %v126_v48 = vmul.f32 %v274_v46, %v125_v47 }
 0x13d   :  { %v127_v49 = vmul.f32 0.5, %v126_v48 }
 0x13f   :  { %v128_v50 = vsub.f32 1.5, %v127_v49 }
 0x141   :  { %v129_v52 = vmul.f32 %v274_v46, %v128_v50 }
 0x143   :  { %v133_v53 = vsel %vm132_vm2, %v274_v46, %v129_v52 }
 0x144   :  { %v136_v55 = vmul.f32 %v135_v51, %v133_v53 }
 0x146   :  { %v137_v57 = vmul.f32 %v136_v55, %v134_v54 }
 0x148   :  { %v139_v58 = vadd.f32 %v138_v56, %v137_v57 }
 0x14a   :  { %v140_v59 = vmax.f32 %v139_v58, 0.0 }
 0x14c   :  { %175 = vmatmul.f32.vlgmr.msra.gmra.mxu1 %v140_v59 }
 0x1c9   :  { %v176_v62 = vpop.f32.mrf.mxu1 }
 0x1ca   :  { %v177_v63 = vadd.f32 %v176_v62, %v158_v61 }
 0x1cc   :  { %179 = vadd.xlane.f32.xlu1 %v177_v63  ;;  %v182_v0 = vmul.f32 %v177_v63, %v177_v63 }
 0x1d4   :  { %183 = vadd.xlane.f32.xlu1 %v182_v0 }
 0x23f   :  { %v180_v13 = vpop.xlane.xlu1 %179 }
 0x240   :  { %v181_v16 = vmul.f32 0.015625, %v180_v13 }
 0x242   :  { %v186_v20 = vmul.f32 %v181_v16, %v181_v16  ;;  %v200_v33 = vsub.f32 %v177_v63, %v181_v16 }
 0x247   :  { %v184_v19 = vpop.xlane.xlu1 %183 }
 0x248   :  { %v185_v21 = vmul.f32 0.015625, %v184_v19 }
 0x24a   :  { %v187_v22 = vsub.f32 %v185_v21, %v186_v20 }
 0x24c   :  { %v188_v23 = vmax.f32 %v187_v22, 0.0 }
 0x24e   :  { %v189_v24 = vadd.f32 1e-05, %v188_v23 }
 0x250   :  { %275 = vrsqrt.f32 %v189_v24  ;;  %vm196_vm4 = vweird.f32 %v189_v24 }
 0x256   :  { %v276_v25 = vpop.eup %275 }
 0x257   :  { %v191_v26 = vmul.f32 %v276_v25, %v189_v24  ;;  %vm197_vm3 = vweird.f32 %v276_v25 }
 0x258   :  { %vm198_vm5 = vmor %vm196_vm4, %vm197_vm3 }
 0x259   :  { %v192_v27 = vmul.f32 %v276_v25, %v191_v26 }
 0x25b   :  { %v193_v28 = vmul.f32 0.5, %v192_v27 }
 0x25d   :  { %v194_v29 = vsub.f32 1.5, %v193_v28 }
 0x25f   :  { %v195_v31 = vmul.f32 %v276_v25, %v194_v29 }
 0x261   :  { %v199_v32 = vsel %vm198_vm5, %v276_v25, %v195_v31 }
 0x262   :  { %v202_v34 = vmul.f32 %v201_v30, %v199_v32 }
 0x264   :  { %v203_v36 = vmul.f32 %v202_v34, %v200_v33 }
 0x266   :  { %v205_v37 = vadd.f32 %v204_v35, %v203_v36 }
 0x268   :  { %v206_v38 = vmax.f32 %v205_v37, 0.0 }
 0x26a   :  { %243 = vmatmul.f32.vlgmr.msra.gmra.mxu2 %v206_v38 }
 0x2ed   :  { %v244_v40 = vpop.f32.mrf.mxu2 }
 0x2ee   :  { %v245_v41 = vadd.f32 %v272_v39, %v244_v40 }
 0x2f0   :  { %247 = vst [vmem:[#allocation8] sm:$0xff] %v245_v41 }
 0x2f1   :  { %258 = dma.vmem_to_hbm [thread:$0]  %s254_s21, 128, %s256_s24, [#allocation4]  }
 0x2f2   :  { %377 = dma.done.wait [#allocation4], 128  }
 0x2f3   :  { %378 = vsyncadd [#allocation4], 4294967168 }
 0x2f4   :  { %263 = vsyncpa [#allocation3], 1 }
 0x2f5   :  { %264 = vsyncpa [#allocation6], 1 }
 0x2f6   :  { %265 = vsyncpa [#allocation4], 1 }

</bundles_post_ra>
